<compile_context>
chip_gen: v7x
topology: tpu7x:2x2x1
jax: 0.10.0
libtpu: 0.0.40
codegen_flags: <defaults>
</compile_context>

<pallas_src>
import functools

import jax
import jax.numpy as jnp
from jax.experimental import pallas as pl
from jax.experimental.pallas import tpu as pltpu


def _round_up(x, m):
    return ((x + m - 1) // m) * m


def _pick_tiling(n):
    """(tile_width, num_tiles) along the output-feature axis.

    One full-width tile on single-TC chips (v5e/v6e); two lane-dense tiles on
    v7x so each TensorCore streams half of the HBM-bound weight.
    """
    try:
        kind = jax.devices()[0].device_kind.lower()
    except Exception:  # defensive: fall back to the single-tile layout
        kind = ""
    n_cores = 2 if "v7" in kind else 1
    if n_cores == 1:
        return n, 1
    tn = _round_up(pl.cdiv(n, n_cores), 128)
    return tn, pl.cdiv(n, tn)


def _mynet_kernel(x_ref, w_ref, o_ref):
    # x_ref: (B, K+1) bf16, w_ref: (K+1, TN) bf16, o_ref: (B, TN) f32
    o_ref[...] = jnp.dot(
        x_ref[...], w_ref[...], preferred_element_type=jnp.float32
    ).astype(o_ref.dtype)


def prepare_params(w1_t, b1, w2_t, b2):
    """One-time prep (outside the hot path).

    Folds linear1 into linear2 and the combined bias into the weight as an
    extra K row, then casts to bf16.

    w1_t: (K, 1), b1: (1,), w2_t: (K, N), b2: (N,)  ->  (K+1, N) bf16
    """
    w_comb = (w2_t + w1_t).astype(jnp.float32)        # (K, N), (K, 1) broadcast over N
    b_comb = (b2 + b1).astype(jnp.float32)[None, :]   # (1, N)
    return jnp.concatenate([w_comb, b_comb], axis=0).astype(jnp.bfloat16)


@functools.partial(jax.jit, static_argnames=("tn", "n_tiles"))
def mynet_forward(x, wb, tn, n_tiles):
    """x: (B, K) f32;  wb: (K+1, N) bf16 folded weight+bias."""
    B, K = x.shape
    kp1, N = wb.shape
    # Append the ones column that multiplies the folded bias row; cast to bf16
    # for the MXU (accumulation stays f32 inside the kernel). x is tiny (B, K).
    x1 = jnp.concatenate([x, jnp.ones((B, 1), x.dtype)], axis=1).astype(jnp.bfloat16)
    return pl.pallas_call(
        _mynet_kernel,
        out_shape=jax.ShapeDtypeStruct((B, N), jnp.float32),
        grid=(n_tiles,),
        in_specs=[
            pl.BlockSpec((B, kp1), lambda j: (0, 0)),   # x1 (resident, tiny)
            pl.BlockSpec((kp1, tn), lambda j: (0, j)),  # folded weight+bias tile
        ],
        out_specs=pl.BlockSpec((B, tn), lambda j: (0, j)),
        compiler_params=pltpu.CompilerParams(
            dimension_semantics=("parallel",),  # v7x: one tile per TensorCore
        ),
    )(x1, wb)


def init_params(key):
    """Deterministic init matching torch.nn.Linear shapes (10->1 and 10->10000)."""
    k1, k2, k3, k4 = jax.random.split(key, 4)
    in_f = 10
    bound = 1.0 / jnp.sqrt(in_f)
    # torch stores weight as (out, in); we keep the transposed (in, out) layout.
    w1_t = jax.random.uniform(k1, (in_f, 1), jnp.float32, -bound, bound)
    b1 = jax.random.uniform(k2, (1,), jnp.float32, -bound, bound)
    w2_t = jax.random.uniform(k3, (in_f, 10000), jnp.float32, -bound, bound)
    b2 = jax.random.uniform(k4, (10000,), jnp.float32, -bound, bound)
    return w1_t, b1, w2_t, b2


if __name__ == "__main__":
    key = jax.random.PRNGKey(0)
    k_x, k_p = jax.random.split(key)

    B = 8  # small batch (multiple of 8 keeps the f32 output sublane-dense)
    x = jax.random.normal(k_x, (B, 10), jnp.float32)
    w1_t, b1, w2_t, b2 = init_params(k_p)

    # One-time fold (linear1 + bias) + bf16 cast, outside the per-call hot path.
    wb = prepare_params(w1_t, b1, w2_t, b2)
    N = wb.shape[1]
    tn, n_tiles = _pick_tiling(N)

    out = mynet_forward(x, wb, tn, n_tiles)
    out = jax.block_until_ready(out)

    # Pure-JAX f32 reference (same math as the PyTorch forward). Tolerance is
    # loosened because weights/activations go through bf16 on the MXU.
    ref = (x @ w2_t + b2[None, :]) + (x @ w1_t + b1[None, :])
    assert out.shape == (B, 10000), out.shape
    assert jnp.allclose(out, ref, atol=6e-2, rtol=6e-2), "mismatch vs reference"

    print("KERNEL_OK")
</pallas_src>

<mosaic_0001>
module attributes {stable_mosaic.version = 11 : i64} {
  func.func @_mynet_kernel(%arg0: i32, %arg1: memref<8x11xbf16, #tpu.memory_space<vmem>>, %arg2: memref<11x10000xbf16, #tpu.memory_space<vmem>>, %arg3: memref<8x10000xf32, #tpu.memory_space<vmem>>) attributes {dimension_semantics = [#tpu.dimension_semantics<parallel>], iteration_bounds = array<i64: 1>, scalar_prefetch = 0 : i64, scratch_operands = 0 : i64, tpu.core_type = #tpu.core_type<tc>, window_params = [{pipeline_mode = #tpu.pipeline_mode<synchronous>, transform_indices = @transform_0, window_bounds = array<i64: 8, 11>}, {transform_indices = @transform_1, window_bounds = array<i64: 11, 10000>}, {transform_indices = @transform_2, window_bounds = array<i64: 8, 10000>}]} {
    %c0 = arith.constant 0 : index
    %c0_0 = arith.constant 0 : index
    %0 = vector.load %arg1[%c0, %c0_0] : memref<8x11xbf16, #tpu.memory_space<vmem>>, vector<8x11xbf16>
    %c0_1 = arith.constant 0 : index
    %c0_2 = arith.constant 0 : index
    %1 = vector.load %arg2[%c0_1, %c0_2] : memref<11x10000xbf16, #tpu.memory_space<vmem>>, vector<11x10000xbf16>
    %cst = arith.constant dense<0.000000e+00> : vector<8x10000xf32>
    %2 = tpu.matmul %0, %1, %cst {dimension_numbers = #tpu.dot_dimension_numbers<[1], [0], [0], [1], [0, 0, 1, 1], [], []>} : vector<8x11xbf16>, vector<11x10000xbf16>, vector<8x10000xf32> -> vector<8x10000xf32>
    %c0_3 = arith.constant 0 : index
    %c0_4 = arith.constant 0 : index
    %3 = vector.load %arg3[%c0_3, %c0_4] : memref<8x10000xf32, #tpu.memory_space<vmem>>, vector<8x10000xf32>
    tpu.vector_store %arg3[%c0_3, %c0_4], %2 {strides = array<i32>} : memref<8x10000xf32, #tpu.memory_space<vmem>>, vector<8x10000xf32>,
    return
  }
  func.func @transform_0(%arg0: i32) -> (i32, i32) {
    %c0_i32 = arith.constant 0 : i32
    %c0_i32_0 = arith.constant 0 : i32
    %c0_i32_1 = arith.constant 0 : i32
    return %c0_i32, %c0_i32_0 : i32, i32
  }
  func.func @transform_1(%arg0: i32) -> (i32, i32) {
    %c0_i32 = arith.constant 0 : i32
    %c0_i32_0 = arith.constant 0 : i32
    return %c0_i32, %arg0 : i32, i32
  }
  func.func @transform_2(%arg0: i32) -> (i32, i32) {
    %c0_i32 = arith.constant 0 : i32
    %c0_i32_0 = arith.constant 0 : i32
    return %c0_i32, %arg0 : i32, i32
  }
}

</mosaic_0001>

<bundles_post_ra>
// kernel: mynet_forward.1
= control target key start
LH: loop header
LB: loop body
LE: loop exit
PB: predicated region body
PF: predicated region fallthrough
CT: control target
= control target key end

     0   :  { %7 = vsyncpa [#allocation3], 0  ;;  %s2957_s0 = inlined_call_operand.vmem [shape: bf16[8,11], index: 0, kind: input, shape index: {}]   ;;  %s2958_s1 = inlined_call_operand.hbm [shape: bf16[11,10000], index: 1, kind: input, shape index: {}]   ;;  %s2959_s2 = inlined_call_operand.hbm [shape: f32[8,10000], index: 2, kind: output, shape index: {}]  }
   0x1   :  { %8 = vsyncpa [#allocation4], 0  ;;  %s2705_s9 = smov [#allocation2]   ;;  %s2657_s13 = scalar_lea.hbm %s2958_s1, 10112 }
   0x2   :  { %s16_s10 = sshll.u32 %s2705_s9, 4  ;;  %p2658_p0 = scmp.ne.s32.totalorder %s2958_s1, %s2657_s13  ;;  %s17_s10 = int_to_ptr.vmem [resolvable:$true] %s16_s10 }
   0x3   :  { %p2661_p1 = scmp.lt.u32.totalorder %s2657_s13, %s2958_s1 }
   0x5   :  { %p2663_p2 = pnand %p2661_p1, %p2658_p0 }
   0x7   :  { %2666 = shalt.err (!%p2663_p2)
}
   0x8   :  { %s2667_s18 = scalar_lea.vmem %s17_s10, 10112  ;;  %p2672_p4 = scmp.lt.s32.totalorder %s17_s10, %s17_s10 }
   0x9   :  { %p2668_p3 = scmp.ne.s32.totalorder %s17_s10, %s2667_s18  ;;  %p2673_p5 = scmp.lt.s32.totalorder %s2667_s18, %s2667_s18 }
   0xb   :  { %p2674_p6 = por %p2673_p5, %p2672_p4 }
   0xd   :  { %p2675_p7 = pnand %p2674_p6, %p2668_p3 }
   0xf   :  { %2678 = shalt.err (!%p2675_p7)
}
  0x10   :  { %s2706_s19 = smov 5056   ;;  %s2707_s20 = smov 316  }
  0x11   :  { %22 = dma.hbm_to_vmem [thread:$0]  %s2958_s1, 10112, %s17_s10, [#allocation3], %s2706_s19, %s2706_s19, %s2707_s20  }
  0x12   :  { %2701 = dma.done.wait [#allocation3], 10112  }
  0x13   :  { %2702 = vsyncadd [#allocation3], 4294957184  ;;  %vm429_vm0 = vcmask 1044480   ;;  %v2708_v0 = vmov 0   ;;  %vm430_vm1 = vcmask 1045504   ;;  %v2709_v1 = vmov 65535  }
  0x14   :  { %702 = vmatprep.mubr.bf16.mxu0 %v2708_v0  ;;  %743 = vmatprep.mubr.bf16.mxu1 %v2708_v0  ;;  %v431_v2 = vsel %vm429_vm0, 4294967295, %v2709_v1  ;;  %v2539_v4 = vld [vmem:[#allocation2 + $0x4] ss:$316 sps:$4 sm:$0x3f]   ;;  %vm425_vm2 = vcmask 89088   ;;  %vm2711_vm3 = vmmov 0  }
  0x15   :  { %v2742_v3 = vsel %vm430_vm1, %v431_v2, 0  ;;  %v2541_v5 = vld [vmem:[#allocation2 + $0xc] ss:$316 sps:$4 sm:$0x3f]   ;;  %v2751_v12 = vld [vmem:[%s2957_s0] sm:$0xf] }
  0x16   :  { %v437_v6 = vand.u32 %v2539_v4, %v2742_v3  ;;  %v2543_v7 = vld [vmem:[#allocation2] ss:$316 sps:$4 sm:$0x3f]   ;;  %v2544_v8 = vld [vmem:[#allocation2 + $0x8] ss:$316 sps:$4 sm:$0x3f]   ;;  %v443_v9 = vand.u32 %v2541_v5, %v2742_v3 }
  0x17   :  { %v434_v10 = vand.u32 %v2543_v7, %v2742_v3  ;;  %v440_v11 = vand.u32 %v2544_v8, %v2742_v3  ;;  %v2545_v13 = vld [vmem:[#allocation2 + $0x10] ss:$316 sps:$4 sm:$0x3f]   ;;  %v2548_v15 = vld [vmem:[#allocation2 + $0x18] ss:$316 sps:$4 sm:$0x3f]  }
  0x18   :  { %670 = vmatprep.subr.bf16.mxu0 %v437_v6  ;;  %v2547_v14 = vld [vmem:[#allocation2 + $0x14] ss:$316 sps:$4 sm:$0x3f]   ;;  %711 = vmatprep.subr.bf16.mxu1 %v443_v9  ;;  %v2550_v17 = vld [vmem:[#allocation2 + $0x1c] ss:$316 sps:$4 sm:$0x3f]   ;;  %v446_v18 = vand.u32 %v2545_v13, %v2742_v3  ;;  %v452_v19 = vand.u32 %v2548_v15, %v2742_v3 }
  0x19   :  { %671 = vmatpush1.bf16.msra.mxu0 %v434_v10  ;;  %712 = vmatpush1.bf16.msra.mxu1 %v440_v11  ;;  %v449_v16 = vand.u32 %v2547_v14, %v2742_v3  ;;  %v2553_v20 = vld [vmem:[#allocation2 + $0x24] ss:$316 sps:$4 sm:$0x3f]   ;;  %v455_v21 = vand.u32 %v2550_v17, %v2742_v3  ;;  %v2556_v23 = vld [vmem:[#allocation2 + $0x2c] ss:$316 sps:$4 sm:$0x3f]  }
  0x1a   :  { %v461_v22 = vand.u32 %v2553_v20, %v2742_v3  ;;  %v2551_v24 = vld [vmem:[#allocation2 + $0x20] ss:$316 sps:$4 sm:$0x3f]   ;;  %v2554_v25 = vld [vmem:[#allocation2 + $0x28] ss:$316 sps:$4 sm:$0x3f]   ;;  %v467_v26 = vand.u32 %v2556_v23, %v2742_v3 }
  0x1b   :  { %752 = vmatprep.subr.bf16.mxu0 %v449_v16  ;;  %793 = vmatprep.subr.bf16.mxu1 %v455_v21  ;;  %v2559_v27 = vld [vmem:[#allocation2 + $0x34] ss:$316 sps:$4 sm:$0x3f]   ;;  %v2562_v28 = vld [vmem:[#allocation2 + $0x3c] ss:$316 sps:$4 sm:$0x3f]   ;;  %v458_v29 = vand.u32 %v2551_v24, %v2742_v3  ;;  %v464_v30 = vand.u32 %v2554_v25, %v2742_v3 }
  0x1c   :  { %2483 = vmatmul.mubr.msk.bf16.vlgmr.msra.gmra.mrb[0].mxu0 %vm425_vm2, %v2751_v12  ;;  %2484 = vmatmul.mubr.msk.bf16.vlgmr.msra.gmra.mrb[0].mxu1 %vm425_vm2, %v2751_v12  ;;  %v473_v31 = vand.u32 %v2559_v27, %v2742_v3  ;;  %v479_v32 = vand.u32 %v2562_v28, %v2742_v3  ;;  %v2557_v33 = vld [vmem:[#allocation2 + $0x30] ss:$316 sps:$4 sm:$0x3f]   ;;  %v2560_v34 = vld [vmem:[#allocation2 + $0x38] ss:$316 sps:$4 sm:$0x3f]  }
  0x1d   :  { %753 = vmatpush1.bf16.msra.mxu0 %v446_v18  ;;  %794 = vmatpush1.bf16.msra.mxu1 %v452_v19  ;;  %v2565_v35 = vld [vmem:[#allocation2 + $0x44] ss:$316 sps:$4 sm:$0x3f]   ;;  %v2568_v36 = vld [vmem:[#allocation2 + $0x4c] ss:$316 sps:$4 sm:$0x3f]   ;;  %v470_v37 = vand.u32 %v2557_v33, %v2742_v3  ;;  %v476_v38 = vand.u32 %v2560_v34, %v2742_v3 }
  0x1e   :  { %784 = vmatprep.mubr.bf16.mxu0 %v2708_v0  ;;  %825 = vmatprep.mubr.bf16.mxu1 %v2708_v0  ;;  %v485_v39 = vand.u32 %v2565_v35, %v2742_v3  ;;  %v491_v40 = vand.u32 %v2568_v36, %v2742_v3  ;;  %v2563_v41 = vld [vmem:[#allocation2 + $0x40] ss:$316 sps:$4 sm:$0x3f]   ;;  %v2566_v42 = vld [vmem:[#allocation2 + $0x48] ss:$316 sps:$4 sm:$0x3f]  }
  0x1f   :  { %834 = vmatprep.subr.bf16.mxu0 %v461_v22  ;;  %875 = vmatprep.subr.bf16.mxu1 %v467_v26  ;;  %v2571_v43 = vld [vmem:[#allocation2 + $0x54] ss:$316 sps:$4 sm:$0x3f]   ;;  %v2574_v44 = vld [vmem:[#allocation2 + $0x5c] ss:$316 sps:$4 sm:$0x3f]   ;;  %v482_v45 = vand.u32 %v2563_v41, %v2742_v3  ;;  %v488_v46 = vand.u32 %v2566_v42, %v2742_v3 }
  0x20   :  { %v497_v47 = vand.u32 %v2571_v43, %v2742_v3  ;;  %v503_v48 = vand.u32 %v2574_v44, %v2742_v3  ;;  %v2569_v49 = vld [vmem:[#allocation2 + $0x50] ss:$316 sps:$4 sm:$0x3f]   ;;  %v2572_v50 = vld [vmem:[#allocation2 + $0x58] ss:$316 sps:$4 sm:$0x3f]  }
  0x21   :  { %v2577_v51 = vld [vmem:[#allocation2 + $0x64] ss:$316 sps:$4 sm:$0x3f]   ;;  %v2580_v52 = vld [vmem:[#allocation2 + $0x6c] ss:$316 sps:$4 sm:$0x3f]   ;;  %v494_v53 = vand.u32 %v2569_v49, %v2742_v3  ;;  %v500_v54 = vand.u32 %v2572_v50, %v2742_v3 }
  0x22   :  { %v509_v55 = vand.u32 %v2577_v51, %v2742_v3  ;;  %v515_v56 = vand.u32 %v2580_v52, %v2742_v3  ;;  %v2575_v57 = vld [vmem:[#allocation2 + $0x60] ss:$316 sps:$4 sm:$0x3f]   ;;  %v2578_v58 = vld [vmem:[#allocation2 + $0x68] ss:$316 sps:$4 sm:$0x3f]  }
  0x23   :  { %v2583_v59 = vld [vmem:[#allocation2 + $0x74] ss:$316 sps:$4 sm:$0x3f]   ;;  %v2586_v60 = vld [vmem:[#allocation2 + $0x7c] ss:$316 sps:$4 sm:$0x3f]   ;;  %v506_v61 = vand.u32 %v2575_v57, %v2742_v3  ;;  %v512_v62 = vand.u32 %v2578_v58, %v2742_v3 }
  0x24   :  { %2485 = vmatmul.mubr.msk.bf16.vlgmr.msra.gmra.mrb[4].mxu0 %vm425_vm2, %v2751_v12  ;;  %2486 = vmatmul.mubr.msk.bf16.vlgmr.msra.gmra.mrb[4].mxu1 %vm425_vm2, %v2751_v12  ;;  %v521_v63 = vand.u32 %v2583_v59, %v2742_v3  ;;  %v527_v1 = vand.u32 %v2586_v60, %v2742_v3  ;;  %v2581_v2 = vld [vmem:[#allocation2 + $0x70] ss:$316 sps:$4 sm:$0x3f]   ;;  %v2584_v4 = vld [vmem:[#allocation2 + $0x78] ss:$316 sps:$4 sm:$0x3f]  }
  0x25   :  { %835 = vmatpush1.bf16.msra.mxu0 %v458_v29  ;;  %876 = vmatpush1.bf16.msra.mxu1 %v464_v30  ;;  %v2589_v5 = vld [vmem:[#allocation2 + $0x84] ss:$316 sps:$4 sm:$0x3f]   ;;  %v2592_v6 = vld [vmem:[#allocation2 + $0x8c] ss:$316 sps:$4 sm:$0x3f]   ;;  %v518_v7 = vand.u32 %v2581_v2, %v2742_v3  ;;  %v524_v8 = vand.u32 %v2584_v4, %v2742_v3 }
  0x26   :  { %866 = vmatprep.mubr.bf16.mxu0 %v2708_v0  ;;  %907 = vmatprep.mubr.bf16.mxu1 %v2708_v0  ;;  %v533_v9 = vand.u32 %v2589_v5, %v2742_v3  ;;  %v539_v10 = vand.u32 %v2592_v6, %v2742_v3  ;;  %v2587_v11 = vld [vmem:[#allocation2 + $0x80] ss:$316 sps:$4 sm:$0x3f]   ;;  %v2590_v13 = vld [vmem:[#allocation2 + $0x88] ss:$316 sps:$4 sm:$0x3f]  }
  0x27   :  { %916 = vmatprep.subr.bf16.mxu0 %v473_v31  ;;  %957 = vmatprep.subr.bf16.mxu1 %v479_v32  ;;  %v2595_v14 = vld [vmem:[#allocation2 + $0x94] ss:$316 sps:$4 sm:$0x3f]   ;;  %v2598_v15 = vld [vmem:[#allocation2 + $0x9c] ss:$316 sps:$4 sm:$0x3f]   ;;  %v530_v16 = vand.u32 %v2587_v11, %v2742_v3  ;;  %v536_v17 = vand.u32 %v2590_v13, %v2742_v3 }
  0x28   :  { %v545_v18 = vand.u32 %v2595_v14, %v2742_v3  ;;  %v551_v19 = vand.u32 %v2598_v15, %v2742_v3  ;;  %v2593_v20 = vld [vmem:[#allocation2 + $0x90] ss:$316 sps:$4 sm:$0x3f]   ;;  %v2596_v21 = vld [vmem:[#allocation2 + $0x98] ss:$316 sps:$4 sm:$0x3f]  }
  0x29   :  { %v2601_v22 = vld [vmem:[#allocation2 + $0xa4] ss:$316 sps:$4 sm:$0x3f]   ;;  %v2604_v23 = vld [vmem:[#allocation2 + $0xac] ss:$316 sps:$4 sm:$0x3f]   ;;  %v542_v24 = vand.u32 %v2593_v20, %v2742_v3  ;;  %v548_v25 = vand.u32 %v2596_v21, %v2742_v3 }
  0x2a   :  { %v557_v26 = vand.u32 %v2601_v22, %v2742_v3  ;;  %v563_v27 = vand.u32 %v2604_v23, %v2742_v3  ;;  %v2599_v28 = vld [vmem:[#allocation2 + $0xa0] ss:$316 sps:$4 sm:$0x3f]   ;;  %v2602_v29 = vld [vmem:[#allocation2 + $0xa8] ss:$316 sps:$4 sm:$0x3f]  }
  0x2b   :  { %v2607_v30 = vld [vmem:[#allocation2 + $0xb4] ss:$316 sps:$4 sm:$0x3f]   ;;  %v2610_v31 = vld [vmem:[#allocation2 + $0xbc] ss:$316 sps:$4 sm:$0x3f]   ;;  %v554_v32 = vand.u32 %v2599_v28, %v2742_v3  ;;  %v560_v33 = vand.u32 %v2602_v29, %v2742_v3 }
  0x2c   :  { %2487 = vmatmul.mubr.msk.bf16.vlgmr.msra.gmra.mrb[8].mxu0 %vm425_vm2, %v2751_v12  ;;  %2488 = vmatmul.mubr.msk.bf16.vlgmr.msra.gmra.mrb[8].mxu1 %vm425_vm2, %v2751_v12  ;;  %v569_v34 = vand.u32 %v2607_v30, %v2742_v3  ;;  %v575_v35 = vand.u32 %v2610_v31, %v2742_v3  ;;  %v2605_v36 = vld [vmem:[#allocation2 + $0xb0] ss:$316 sps:$4 sm:$0x3f]   ;;  %v2611_v44 = vld [vmem:[#allocation2 + $0xc0] ss:$316 sps:$4 sm:$0x3f]  }
  0x2d   :  { %917 = vmatpush1.bf16.msra.mxu0 %v470_v37  ;;  %958 = vmatpush1.bf16.msra.mxu1 %v476_v38  ;;  %v2608_v37 = vld [vmem:[#allocation2 + $0xb8] ss:$316 sps:$4 sm:$0x3f]   ;;  %v2613_v38 = vld [vmem:[#allocation2 + $0xc4] ss:$316 sps:$4 sm:$0x3f]  }
  0x2e   :  { %948 = vmatprep.mubr.bf16.mxu0 %v2708_v0  ;;  %989 = vmatprep.mubr.bf16.mxu1 %v2708_v0  ;;  %v572_v41 = vand.u32 %v2608_v37, %v2742_v3  ;;  %v581_v42 = vand.u32 %v2613_v38, %v2742_v3  ;;  %v2617_v52 = vld [vmem:[#allocation2 + $0xd0] ss:$316 sps:$4 sm:$0x3f]   ;;  %v2623_v60 = vld [vmem:[#allocation2 + $0xe0] ss:$316 sps:$4 sm:$0x3f]  }
  0x2f   :  { %998 = vmatprep.subr.bf16.mxu0 %v485_v39  ;;  %1039 = vmatprep.subr.bf16.mxu1 %v491_v40  ;;  %v2616_v39 = vld [vmem:[#allocation2 + $0xcc] ss:$316 sps:$4 sm:$0x3f]   ;;  %v566_v40 = vand.u32 %v2605_v36, %v2742_v3  ;;  %v2635_v15 = vld [vmem:[#allocation2 + $0x100] ss:$316 sps:$4 sm:$0x3f]  }
  0x30   :  { %v587_v43 = vand.u32 %v2616_v39, %v2742_v3  ;;  %v2629_v6 = vld [vmem:[#allocation2 + $0xf0] ss:$316 sps:$4 sm:$0x3f]   ;;  %v2647_v31 = vld [vmem:[#allocation2 + $0x120] ss:$316 sps:$4 sm:$0x3f]  }
  0x31   :  { %v2641_v23 = vld [vmem:[#allocation2 + $0x110] ss:$316 sps:$4 sm:$0x3f]   ;;  %v2656_v38 = vld [vmem:[#allocation2 + $0x138] ss:$316 sps:$4 sm:$0x3f]  }
  0x32   :  { %v2653_v37 = vld [vmem:[#allocation2 + $0x130] ss:$316 sps:$4 sm:$0x3f]   ;;  %v2710_v39 = vmov 0.0   ;;  %s2712_s0 = smov [#allocation5]   ;;  %vm2387_vm4 = vcmask 130048  }
  0x33   :  { %s2395_s24 = sshll.u32 %s2712_s0, 4  ;;  %s2396_s24 = int_to_ptr.vmem [resolvable:$true] %s2395_s24 }
  0x34   :  { %2489 = vmatmul.mubr.msk.bf16.vlgmr.msra.gmra.mrb[12].mxu0 %vm425_vm2, %v2751_v12  ;;  %2490 = vmatmul.mubr.msk.bf16.vlgmr.msra.gmra.mrb[12].mxu1 %vm425_vm2, %v2751_v12  ;;  %s2679_s25 = scalar_lea.vmem %s2396_s24, 10112  ;;  %p2684_p9 = scmp.lt.s32.totalorder %s2396_s24, %s2396_s24 }
  0x35   :  { %999 = vmatpush1.bf16.msra.mxu0 %v482_v45  ;;  %1040 = vmatpush1.bf16.msra.mxu1 %v488_v46  ;;  %v2614_v45 = vld [vmem:[#allocation2 + $0xc8] ss:$316 sps:$4 sm:$0x3f]   ;;  %v2619_v46 = vld [vmem:[#allocation2 + $0xd4] ss:$316 sps:$4 sm:$0x3f]   ;;  %p2680_p8 = scmp.ne.s32.totalorder %s2396_s24, %s2679_s25  ;;  %p2685_p10 = scmp.lt.s32.totalorder %s2679_s25, %s2679_s25 }
  0x36   :  { %1030 = vmatprep.mubr.bf16.mxu0 %v2708_v0  ;;  %1071 = vmatprep.mubr.bf16.mxu1 %v2708_v0  ;;  %v584_v49 = vand.u32 %v2614_v45, %v2742_v3  ;;  %v593_v50 = vand.u32 %v2619_v46, %v2742_v3 }
  0x37   :  { %1080 = vmatprep.subr.bf16.mxu0 %v497_v47  ;;  %1121 = vmatprep.subr.bf16.mxu1 %v503_v48  ;;  %v2622_v47 = vld [vmem:[#allocation2 + $0xdc] ss:$316 sps:$4 sm:$0x3f]   ;;  %v578_v48 = vand.u32 %v2611_v44, %v2742_v3  ;;  %p2686_p11 = por %p2685_p10, %p2684_p9 }
  0x38   :  { %v599_v51 = vand.u32 %v2622_v47, %v2742_v3 }
  0x39   :  { %p2687_p12 = pnand %p2686_p11, %p2680_p8 }
  0x3c   :  { %2491 = vmatmul.mubr.msk.bf16.vlgmr.msra.gmra.mrb[16].mxu0 %vm425_vm2, %v2751_v12  ;;  %2492 = vmatmul.mubr.msk.bf16.vlgmr.msra.gmra.mrb[16].mxu1 %vm425_vm2, %v2751_v12 }
  0x3d   :  { %1081 = vmatpush1.bf16.msra.mxu0 %v494_v53  ;;  %1122 = vmatpush1.bf16.msra.mxu1 %v500_v54  ;;  %v2620_v53 = vld [vmem:[#allocation2 + $0xd8] ss:$316 sps:$4 sm:$0x3f]   ;;  %v2625_v54 = vld [vmem:[#allocation2 + $0xe4] ss:$316 sps:$4 sm:$0x3f]  }
  0x3e   :  { %1112 = vmatprep.mubr.bf16.mxu0 %v2708_v0  ;;  %1153 = vmatprep.mubr.bf16.mxu1 %v2708_v0  ;;  %v596_v57 = vand.u32 %v2620_v53, %v2742_v3  ;;  %v605_v58 = vand.u32 %v2625_v54, %v2742_v3 }
  0x3f   :  { %1162 = vmatprep.subr.bf16.mxu0 %v509_v55  ;;  %1203 = vmatprep.subr.bf16.mxu1 %v515_v56  ;;  %v2628_v55 = vld [vmem:[#allocation2 + $0xec] ss:$316 sps:$4 sm:$0x3f]   ;;  %v590_v56 = vand.u32 %v2617_v52, %v2742_v3 }
  0x40   :  { %v611_v59 = vand.u32 %v2628_v55, %v2742_v3 }
  0x44   :  { %2493 = vmatmul.mubr.msk.bf16.vlgmr.msra.gmra.mrb[20].mxu0 %vm425_vm2, %v2751_v12  ;;  %2494 = vmatmul.mubr.msk.bf16.vlgmr.msra.gmra.mrb[20].mxu1 %vm425_vm2, %v2751_v12 }
  0x45   :  { %1163 = vmatpush1.bf16.msra.mxu0 %v506_v61  ;;  %1204 = vmatpush1.bf16.msra.mxu1 %v512_v62  ;;  %v2626_v61 = vld [vmem:[#allocation2 + $0xe8] ss:$316 sps:$4 sm:$0x3f]   ;;  %v2631_v62 = vld [vmem:[#allocation2 + $0xf4] ss:$316 sps:$4 sm:$0x3f]  }
  0x46   :  { %1194 = vmatprep.mubr.bf16.mxu0 %v2708_v0  ;;  %1235 = vmatprep.mubr.bf16.mxu1 %v2708_v0  ;;  %v608_v2 = vand.u32 %v2626_v61, %v2742_v3  ;;  %v617_v4 = vand.u32 %v2631_v62, %v2742_v3 }
  0x47   :  { %1244 = vmatprep.subr.bf16.mxu0 %v521_v63  ;;  %1285 = vmatprep.subr.bf16.mxu1 %v527_v1  ;;  %v2634_v63 = vld [vmem:[#allocation2 + $0xfc] ss:$316 sps:$4 sm:$0x3f]   ;;  %v602_v1 = vand.u32 %v2623_v60, %v2742_v3 }
  0x48   :  { %v623_v5 = vand.u32 %v2634_v63, %v2742_v3 }
  0x4c   :  { %2495 = vmatmul.mubr.msk.bf16.vlgmr.msra.gmra.mrb[24].mxu0 %vm425_vm2, %v2751_v12  ;;  %2496 = vmatmul.mubr.msk.bf16.vlgmr.msra.gmra.mrb[24].mxu1 %vm425_vm2, %v2751_v12 }
  0x4d   :  { %1245 = vmatpush1.bf16.msra.mxu0 %v518_v7  ;;  %1286 = vmatpush1.bf16.msra.mxu1 %v524_v8  ;;  %v2632_v7 = vld [vmem:[#allocation2 + $0xf8] ss:$316 sps:$4 sm:$0x3f]   ;;  %v2637_v8 = vld [vmem:[#allocation2 + $0x104] ss:$316 sps:$4 sm:$0x3f]  }
  0x4e   :  { %1276 = vmatprep.mubr.bf16.mxu0 %v2708_v0  ;;  %1317 = vmatprep.mubr.bf16.mxu1 %v2708_v0  ;;  %v620_v11 = vand.u32 %v2632_v7, %v2742_v3  ;;  %v629_v13 = vand.u32 %v2637_v8, %v2742_v3 }
  0x4f   :  { %1326 = vmatprep.subr.bf16.mxu0 %v533_v9  ;;  %1367 = vmatprep.subr.bf16.mxu1 %v539_v10  ;;  %v2640_v9 = vld [vmem:[#allocation2 + $0x10c] ss:$316 sps:$4 sm:$0x3f]   ;;  %v614_v10 = vand.u32 %v2629_v6, %v2742_v3 }
  0x50   :  { %v635_v14 = vand.u32 %v2640_v9, %v2742_v3 }
  0x54   :  { %2497 = vmatmul.mubr.msk.bf16.vlgmr.msra.gmra.mrb[28].mxu0 %vm425_vm2, %v2751_v12  ;;  %2498 = vmatmul.mubr.msk.bf16.vlgmr.msra.gmra.mrb[28].mxu1 %vm425_vm2, %v2751_v12 }
  0x55   :  { %1327 = vmatpush1.bf16.msra.mxu0 %v530_v16  ;;  %1368 = vmatpush1.bf16.msra.mxu1 %v536_v17  ;;  %v2638_v16 = vld [vmem:[#allocation2 + $0x108] ss:$316 sps:$4 sm:$0x3f]   ;;  %v2643_v17 = vld [vmem:[#allocation2 + $0x114] ss:$316 sps:$4 sm:$0x3f]  }
  0x56   :  { %1358 = vmatprep.mubr.bf16.mxu0 %v2708_v0  ;;  %1399 = vmatprep.mubr.bf16.mxu1 %v2708_v0  ;;  %v632_v20 = vand.u32 %v2638_v16, %v2742_v3  ;;  %v641_v21 = vand.u32 %v2643_v17, %v2742_v3 }
  0x57   :  { %1408 = vmatprep.subr.bf16.mxu0 %v545_v18  ;;  %1449 = vmatprep.subr.bf16.mxu1 %v551_v19  ;;  %v2646_v18 = vld [vmem:[#allocation2 + $0x11c] ss:$316 sps:$4 sm:$0x3f]   ;;  %v626_v19 = vand.u32 %v2635_v15, %v2742_v3 }
  0x58   :  { %v647_v22 = vand.u32 %v2646_v18, %v2742_v3 }
  0x5c   :  { %2499 = vmatmul.mubr.msk.bf16.vlgmr.msra.gmra.mrb[32].mxu0 %vm425_vm2, %v2751_v12  ;;  %2500 = vmatmul.mubr.msk.bf16.vlgmr.msra.gmra.mrb[32].mxu1 %vm425_vm2, %v2751_v12 }
  0x5d   :  { %1409 = vmatpush1.bf16.msra.mxu0 %v542_v24  ;;  %1450 = vmatpush1.bf16.msra.mxu1 %v548_v25  ;;  %v2644_v24 = vld [vmem:[#allocation2 + $0x118] ss:$316 sps:$4 sm:$0x3f]   ;;  %v2649_v25 = vld [vmem:[#allocation2 + $0x124] ss:$316 sps:$4 sm:$0x3f]  }
  0x5e   :  { %1440 = vmatprep.mubr.bf16.mxu0 %v2708_v0  ;;  %1481 = vmatprep.mubr.bf16.mxu1 %v2708_v0  ;;  %v644_v28 = vand.u32 %v2644_v24, %v2742_v3  ;;  %v653_v29 = vand.u32 %v2649_v25, %v2742_v3 }
  0x5f   :  { %1490 = vmatprep.subr.bf16.mxu0 %v557_v26  ;;  %1531 = vmatprep.subr.bf16.mxu1 %v563_v27  ;;  %v2652_v26 = vld [vmem:[#allocation2 + $0x12c] ss:$316 sps:$4 sm:$0x3f]   ;;  %v638_v27 = vand.u32 %v2641_v23, %v2742_v3 }
  0x60   :  { %v659_v30 = vand.u32 %v2652_v26, %v2742_v3 }
  0x64   :  { %2501 = vmatmul.mubr.msk.bf16.vlgmr.msra.gmra.mrb[36].mxu0 %vm425_vm2, %v2751_v12  ;;  %2502 = vmatmul.mubr.msk.bf16.vlgmr.msra.gmra.mrb[36].mxu1 %vm425_vm2, %v2751_v12 }
  0x65   :  { %1491 = vmatpush1.bf16.msra.mxu0 %v554_v32  ;;  %1532 = vmatpush1.bf16.msra.mxu1 %v560_v33  ;;  %v2650_v32 = vld [vmem:[#allocation2 + $0x128] ss:$316 sps:$4 sm:$0x3f]   ;;  %v2655_v33 = vld [vmem:[#allocation2 + $0x134] ss:$316 sps:$4 sm:$0x3f]  }
  0x66   :  { %1522 = vmatprep.mubr.bf16.mxu0 %v2708_v0  ;;  %1563 = vmatprep.mubr.bf16.mxu1 %v2708_v0  ;;  %v665_v36 = vand.u32 %v2655_v33, %v2742_v3 }
  0x67   :  { %1572 = vmatprep.subr.bf16.mxu0 %v569_v34  ;;  %1613 = vmatprep.subr.bf16.mxu1 %v575_v35  ;;  %v650_v34 = vand.u32 %v2647_v31, %v2742_v3  ;;  %v656_v35 = vand.u32 %v2650_v32, %v2742_v3 }
  0x6c   :  { %2503 = vmatmul.mubr.msk.bf16.vlgmr.msra.gmra.mrb[40].mxu0 %vm425_vm2, %v2751_v12  ;;  %2504 = vmatmul.mubr.msk.bf16.vlgmr.msra.gmra.mrb[40].mxu1 %vm425_vm2, %v2751_v12 }
  0x6d   :  { %1573 = vmatpush1.bf16.msra.mxu0 %v566_v40  ;;  %1614 = vmatpush1.bf16.msra.mxu1 %v572_v41  ;;  %v662_v40 = vand.u32 %v2653_v37, %v2742_v3  ;;  %v668_v41 = vand.u32 %v2656_v38, %v2742_v3 }
  0x6e   :  { %1604 = vmatprep.mubr.bf16.mxu0 %v2708_v0  ;;  %1645 = vmatprep.mubr.bf16.mxu1 %v2708_v0 }
  0x6f   :  { %1654 = vmatprep.subr.bf16.mxu0 %v581_v42  ;;  %1695 = vmatprep.subr.bf16.mxu1 %v587_v43 }
  0x74   :  { %2505 = vmatmul.mubr.msk.bf16.vlgmr.msra.gmra.mrb[44].mxu0 %vm425_vm2, %v2751_v12  ;;  %2506 = vmatmul.mubr.msk.bf16.vlgmr.msra.gmra.mrb[44].mxu1 %vm425_vm2, %v2751_v12 }
  0x75   :  { %1655 = vmatpush1.bf16.msra.mxu0 %v578_v48  ;;  %1696 = vmatpush1.bf16.msra.mxu1 %v584_v49 }
  0x76   :  { %1686 = vmatprep.mubr.bf16.mxu0 %v2708_v0  ;;  %1727 = vmatprep.mubr.bf16.mxu1 %v2708_v0 }
  0x77   :  { %1736 = vmatprep.subr.bf16.mxu0 %v593_v50  ;;  %1777 = vmatprep.subr.bf16.mxu1 %v599_v51 }
  0x7c   :  { %2507 = vmatmul.mubr.msk.bf16.vlgmr.msra.gmra.mrb[48].mxu0 %vm425_vm2, %v2751_v12  ;;  %2508 = vmatmul.mubr.msk.bf16.vlgmr.msra.gmra.mrb[48].mxu1 %vm425_vm2, %v2751_v12 }
  0x7d   :  { %1737 = vmatpush1.bf16.msra.mxu0 %v590_v56  ;;  %1778 = vmatpush1.bf16.msra.mxu1 %v596_v57 }
  0x7e   :  { %1768 = vmatprep.mubr.bf16.mxu0 %v2708_v0  ;;  %1809 = vmatprep.mubr.bf16.mxu1 %v2708_v0 }
  0x7f   :  { %1818 = vmatprep.subr.bf16.mxu0 %v605_v58  ;;  %1859 = vmatprep.subr.bf16.mxu1 %v611_v59 }
  0x84   :  { %2509 = vmatmul.mubr.msk.bf16.vlgmr.msra.gmra.mrb[52].mxu0 %vm425_vm2, %v2751_v12  ;;  %2510 = vmatmul.mubr.msk.bf16.vlgmr.msra.gmra.mrb[52].mxu1 %vm425_vm2, %v2751_v12 }
  0x85   :  { %1819 = vmatpush1.bf16.msra.mxu0 %v602_v1  ;;  %1860 = vmatpush1.bf16.msra.mxu1 %v608_v2 }
  0x86   :  { %1850 = vmatprep.mubr.bf16.mxu0 %v2708_v0  ;;  %1891 = vmatprep.mubr.bf16.mxu1 %v2708_v0 }
  0x87   :  { %1900 = vmatprep.subr.bf16.mxu0 %v617_v4  ;;  %1941 = vmatprep.subr.bf16.mxu1 %v623_v5 }
  0x8c   :  { %2511 = vmatmul.mubr.msk.bf16.vlgmr.msra.gmra.mrb[56].mxu0 %vm425_vm2, %v2751_v12  ;;  %2512 = vmatmul.mubr.msk.bf16.vlgmr.msra.gmra.mrb[56].mxu1 %vm425_vm2, %v2751_v12 }
  0x8d   :  { %1901 = vmatpush1.bf16.msra.mxu0 %v614_v10  ;;  %1942 = vmatpush1.bf16.msra.mxu1 %v620_v11 }
  0x8e   :  { %1932 = vmatprep.mubr.bf16.mxu0 %v2708_v0  ;;  %1973 = vmatprep.mubr.bf16.mxu1 %v2708_v0 }
  0x8f   :  { %1982 = vmatprep.subr.bf16.mxu0 %v629_v13  ;;  %2023 = vmatprep.subr.bf16.mxu1 %v635_v14 }
  0x94   :  { %2513 = vmatmul.mubr.msk.bf16.vlgmr.msra.gmra.mrb[60].mxu0 %vm425_vm2, %v2751_v12  ;;  %2514 = vmatmul.mubr.msk.bf16.vlgmr.msra.gmra.mrb[60].mxu1 %vm425_vm2, %v2751_v12 }
  0x95   :  { %1983 = vmatpush1.bf16.msra.mxu0 %v626_v19  ;;  %2024 = vmatpush1.bf16.msra.mxu1 %v632_v20 }
  0x96   :  { %2014 = vmatprep.mubr.bf16.mxu0 %v2708_v0  ;;  %2055 = vmatprep.mubr.bf16.mxu1 %v2708_v0 }
  0x97   :  { %2064 = vmatprep.subr.bf16.mxu0 %v641_v21  ;;  %2105 = vmatprep.subr.bf16.mxu1 %v647_v22 }
  0x9c   :  { %2515 = vmatmul.mubr.msk.bf16.vlgmr.msra.gmra.mrb[64].mxu0 %vm425_vm2, %v2751_v12  ;;  %2516 = vmatmul.mubr.msk.bf16.vlgmr.msra.gmra.mrb[64].mxu1 %vm425_vm2, %v2751_v12 }
  0x9d   :  { %2065 = vmatpush1.bf16.msra.mxu0 %v638_v27  ;;  %2106 = vmatpush1.bf16.msra.mxu1 %v644_v28 }
  0x9e   :  { %2096 = vmatprep.mubr.bf16.mxu0 %v2708_v0  ;;  %2137 = vmatprep.mubr.bf16.mxu1 %v2708_v0 }
  0x9f   :  { %2146 = vmatprep.subr.bf16.mxu0 %v653_v29  ;;  %2187 = vmatprep.subr.bf16.mxu1 %v659_v30 }
  0xa4   :  { %2517 = vmatmul.mubr.msk.bf16.vlgmr.msra.gmra.mrb[68].mxu0 %vm425_vm2, %v2751_v12  ;;  %2518 = vmatmul.mubr.msk.bf16.vlgmr.msra.gmra.mrb[68].mxu1 %vm425_vm2, %v2751_v12 }
  0xa5   :  { %2147 = vmatpush1.bf16.msra.mxu0 %v650_v34  ;;  %2188 = vmatpush1.bf16.msra.mxu1 %v656_v35 }
  0xa6   :  { %2178 = vmatprep.mubr.bf16.mxu0 %v2708_v0  ;;  %2219 = vmatprep.mubr.bf16.mxu1 %v2708_v0 }
  0xa7   :  { %2228 = vmatprep.subr.bf16.mxu0 %v665_v36  ;;  %2525 = vmatprep.subr.bf16.mxu1 %v2710_v39 }
  0xac   :  { %2519 = vmatmul.mubr.msk.bf16.vlgmr.msra.gmra.mrb[72].mxu0 %vm425_vm2, %v2751_v12  ;;  %2520 = vmatmul.mubr.msk.bf16.vlgmr.msra.gmra.mrb[72].mxu1 %vm425_vm2, %v2751_v12 }
  0xad   :  { %2229 = vmatpush1.bf16.msra.mxu0 %v662_v40  ;;  %2526 = vmatpush3.bf16.msra.mxu1 %v668_v41 }
  0xae   :  { %2260 = vmatprep.mubr.bf16.mxu0 %v2708_v0  ;;  %2527 = vmatprep.mubr.msk.bf16.mxu1 %vm2711_vm3, %v2710_v39 }
  0xb4   :  { %2521 = vmatmul.mubr.msk.bf16.vlgmr.msra.gmra.mrb[76].mxu0 %vm425_vm2, %v2751_v12  ;;  %2528 = vmatmul.mubr.msk.bf16.vlgmr.msra.gmra.mrb[76].mxu1 %vm425_vm2, %v2751_v12 }
  0xef   :  { %v704_v42 = vpop.f32.mrb[0].mxu0  ;;  %v745_v3 = vpop.f32.mrb[0].mxu1 }
  0xf0   :  { %2309 = vst [vmem:[#allocation5] sm:$0xff] %v704_v42  ;;  %2311 = vst [vmem:[#allocation5 + $0x10] sm:$0xff] %v745_v3  ;;  %v706_v43 = vpop.f32.mrb[1].mxu0  ;;  %v747_v44 = vpop.f32.mrb[1].mxu1 }
  0xf1   :  { %2310 = vst [vmem:[#allocation5 + $0x8] sm:$0xff] %v706_v43  ;;  %2312 = vst [vmem:[#allocation5 + $0x18] sm:$0xff] %v747_v44  ;;  %v708_v45 = vpop.f32.mrb[2].mxu0  ;;  %v749_v46 = vpop.f32.mrb[2].mxu1 }
  0xf2   :  { %v709_v47 = vpop.f32.mrb[3].mxu0  ;;  %v750_v0 = vpop.f32.mrb[3].mxu1 }
  0xf7   :  { %v786_v48 = vpop.f32.mrb[4].mxu0  ;;  %v827_v49 = vpop.f32.mrb[4].mxu1 }
  0xf8   :  { %2313 = vst [vmem:[#allocation5 + $0x20] sm:$0xff] %v786_v48  ;;  %2315 = vst [vmem:[#allocation5 + $0x30] sm:$0xff] %v827_v49  ;;  %v788_v50 = vpop.f32.mrb[5].mxu0  ;;  %v829_v51 = vpop.f32.mrb[5].mxu1 }
  0xf9   :  { %2314 = vst [vmem:[#allocation5 + $0x28] sm:$0xff] %v788_v50  ;;  %2316 = vst [vmem:[#allocation5 + $0x38] sm:$0xff] %v829_v51  ;;  %v790_v12 = vpop.f32.mrb[6].mxu0  ;;  %v831_v52 = vpop.f32.mrb[6].mxu1 }
  0xfa   :  { %v791_v53 = vpop.f32.mrb[7].mxu0  ;;  %v832_v54 = vpop.f32.mrb[7].mxu1 }
  0xff   :  { %v868_v55 = vpop.f32.mrb[8].mxu0  ;;  %v909_v56 = vpop.f32.mrb[8].mxu1 }
 0x100   :  { %2317 = vst [vmem:[#allocation5 + $0x40] sm:$0xff] %v868_v55  ;;  %2319 = vst [vmem:[#allocation5 + $0x50] sm:$0xff] %v909_v56  ;;  %v870_v57 = vpop.f32.mrb[9].mxu0  ;;  %v911_v58 = vpop.f32.mrb[9].mxu1 }
 0x101   :  { %2318 = vst [vmem:[#allocation5 + $0x48] sm:$0xff] %v870_v57  ;;  %2320 = vst [vmem:[#allocation5 + $0x58] sm:$0xff] %v911_v58  ;;  %v872_v59 = vpop.f32.mrb[10].mxu0  ;;  %v913_v60 = vpop.f32.mrb[10].mxu1 }
 0x102   :  { %v873_v61 = vpop.f32.mrb[11].mxu0  ;;  %v914_v62 = vpop.f32.mrb[11].mxu1 }
 0x107   :  { %v950_v63 = vpop.f32.mrb[12].mxu0  ;;  %v991_v1 = vpop.f32.mrb[12].mxu1 }
 0x108   :  { %2321 = vst [vmem:[#allocation5 + $0x60] sm:$0xff] %v950_v63  ;;  %2323 = vst [vmem:[#allocation5 + $0x70] sm:$0xff] %v991_v1  ;;  %v952_v2 = vpop.f32.mrb[13].mxu0  ;;  %v993_v4 = vpop.f32.mrb[13].mxu1 }
 0x109   :  { %2322 = vst [vmem:[#allocation5 + $0x68] sm:$0xff] %v952_v2  ;;  %2324 = vst [vmem:[#allocation5 + $0x78] sm:$0xff] %v993_v4  ;;  %v954_v5 = vpop.f32.mrb[14].mxu0  ;;  %v995_v6 = vpop.f32.mrb[14].mxu1 }
 0x10a   :  { %v955_v7 = vpop.f32.mrb[15].mxu0  ;;  %v996_v8 = vpop.f32.mrb[15].mxu1 }
 0x10f   :  { %v1032_v9 = vpop.f32.mrb[16].mxu0  ;;  %v1073_v10 = vpop.f32.mrb[16].mxu1 }
 0x110   :  { %2325 = vst [vmem:[#allocation5 + $0x80] sm:$0xff] %v1032_v9  ;;  %2327 = vst [vmem:[#allocation5 + $0x90] sm:$0xff] %v1073_v10  ;;  %v1034_v11 = vpop.f32.mrb[17].mxu0  ;;  %v1075_v13 = vpop.f32.mrb[17].mxu1 }
 0x111   :  { %2326 = vst [vmem:[#allocation5 + $0x88] sm:$0xff] %v1034_v11  ;;  %2328 = vst [vmem:[#allocation5 + $0x98] sm:$0xff] %v1075_v13  ;;  %v1036_v14 = vpop.f32.mrb[18].mxu0  ;;  %v1077_v15 = vpop.f32.mrb[18].mxu1 }
 0x112   :  { %v1037_v16 = vpop.f32.mrb[19].mxu0  ;;  %v1078_v17 = vpop.f32.mrb[19].mxu1 }
 0x117   :  { %v1114_v18 = vpop.f32.mrb[20].mxu0  ;;  %v1155_v19 = vpop.f32.mrb[20].mxu1 }
 0x118   :  { %2329 = vst [vmem:[#allocation5 + $0xa0] sm:$0xff] %v1114_v18  ;;  %2331 = vst [vmem:[#allocation5 + $0xb0] sm:$0xff] %v1155_v19  ;;  %v1116_v20 = vpop.f32.mrb[21].mxu0  ;;  %v1157_v21 = vpop.f32.mrb[21].mxu1 }
 0x119   :  { %2330 = vst [vmem:[#allocation5 + $0xa8] sm:$0xff] %v1116_v20  ;;  %2332 = vst [vmem:[#allocation5 + $0xb8] sm:$0xff] %v1157_v21  ;;  %v1118_v22 = vpop.f32.mrb[22].mxu0  ;;  %v1159_v23 = vpop.f32.mrb[22].mxu1 }
 0x11a   :  { %v1119_v24 = vpop.f32.mrb[23].mxu0  ;;  %v1160_v25 = vpop.f32.mrb[23].mxu1 }
 0x11f   :  { %v1196_v26 = vpop.f32.mrb[24].mxu0  ;;  %v1237_v27 = vpop.f32.mrb[24].mxu1 }
 0x120   :  { %2333 = vst [vmem:[#allocation5 + $0xc0] sm:$0xff] %v1196_v26  ;;  %2335 = vst [vmem:[#allocation5 + $0xd0] sm:$0xff] %v1237_v27  ;;  %v1198_v28 = vpop.f32.mrb[25].mxu0  ;;  %v1239_v29 = vpop.f32.mrb[25].mxu1 }
 0x121   :  { %2334 = vst [vmem:[#allocation5 + $0xc8] sm:$0xff] %v1198_v28  ;;  %2336 = vst [vmem:[#allocation5 + $0xd8] sm:$0xff] %v1239_v29  ;;  %v1200_v30 = vpop.f32.mrb[26].mxu0  ;;  %v1241_v31 = vpop.f32.mrb[26].mxu1 }
 0x122   :  { %v1201_v32 = vpop.f32.mrb[27].mxu0  ;;  %v1242_v33 = vpop.f32.mrb[27].mxu1 }
 0x127   :  { %v1278_v34 = vpop.f32.mrb[28].mxu0  ;;  %v1319_v35 = vpop.f32.mrb[28].mxu1 }
 0x128   :  { %2337 = vst [vmem:[#allocation5 + $0xe0] sm:$0xff] %v1278_v34  ;;  %2339 = vst [vmem:[#allocation5 + $0xf0] sm:$0xff] %v1319_v35  ;;  %v1280_v36 = vpop.f32.mrb[29].mxu0  ;;  %v1321_v37 = vpop.f32.mrb[29].mxu1 }
 0x129   :  { %2338 = vst [vmem:[#allocation5 + $0xe8] sm:$0xff] %v1280_v36  ;;  %2340 = vst [vmem:[#allocation5 + $0xf8] sm:$0xff] %v1321_v37  ;;  %v1282_v38 = vpop.f32.mrb[30].mxu0  ;;  %v1323_v39 = vpop.f32.mrb[30].mxu1 }
 0x12a   :  { %v1283_v40 = vpop.f32.mrb[31].mxu0  ;;  %v1324_v41 = vpop.f32.mrb[31].mxu1 }
 0x12f   :  { %v1360_v42 = vpop.f32.mrb[32].mxu0  ;;  %v1401_v3 = vpop.f32.mrb[32].mxu1 }
 0x130   :  { %2341 = vst [vmem:[#allocation5 + $0x100] sm:$0xff] %v1360_v42  ;;  %2343 = vst [vmem:[#allocation5 + $0x110] sm:$0xff] %v1401_v3  ;;  %v1362_v43 = vpop.f32.mrb[33].mxu0  ;;  %v1403_v44 = vpop.f32.mrb[33].mxu1 }
 0x131   :  { %2342 = vst [vmem:[#allocation5 + $0x108] sm:$0xff] %v1362_v43  ;;  %2344 = vst [vmem:[#allocation5 + $0x118] sm:$0xff] %v1403_v44  ;;  %v1364_v45 = vpop.f32.mrb[34].mxu0  ;;  %v1405_v46 = vpop.f32.mrb[34].mxu1 }
 0x132   :  { %v1365_v47 = vpop.f32.mrb[35].mxu0  ;;  %v1406_v0 = vpop.f32.mrb[35].mxu1 }
 0x137   :  { %v1442_v48 = vpop.f32.mrb[36].mxu0  ;;  %v1483_v49 = vpop.f32.mrb[36].mxu1 }
 0x138   :  { %2345 = vst [vmem:[#allocation5 + $0x120] sm:$0xff] %v1442_v48  ;;  %2347 = vst [vmem:[#allocation5 + $0x130] sm:$0xff] %v1483_v49  ;;  %v1444_v50 = vpop.f32.mrb[37].mxu0  ;;  %v1485_v51 = vpop.f32.mrb[37].mxu1 }
 0x139   :  { %2346 = vst [vmem:[#allocation5 + $0x128] sm:$0xff] %v1444_v50  ;;  %2348 = vst [vmem:[#allocation5 + $0x138] sm:$0xff] %v1485_v51  ;;  %v1446_v12 = vpop.f32.mrb[38].mxu0  ;;  %v1487_v52 = vpop.f32.mrb[38].mxu1 }
 0x13a   :  { %v1447_v53 = vpop.f32.mrb[39].mxu0  ;;  %v1488_v54 = vpop.f32.mrb[39].mxu1 }
 0x13f   :  { %v1524_v55 = vpop.f32.mrb[40].mxu0  ;;  %v1565_v56 = vpop.f32.mrb[40].mxu1 }
 0x140   :  { %2349 = vst [vmem:[#allocation5 + $0x140] sm:$0xff] %v1524_v55  ;;  %2351 = vst [vmem:[#allocation5 + $0x150] sm:$0xff] %v1565_v56  ;;  %v1526_v57 = vpop.f32.mrb[41].mxu0  ;;  %v1567_v58 = vpop.f32.mrb[41].mxu1 }
 0x141   :  { %2350 = vst [vmem:[#allocation5 + $0x148] sm:$0xff] %v1526_v57  ;;  %2352 = vst [vmem:[#allocation5 + $0x158] sm:$0xff] %v1567_v58  ;;  %v1528_v59 = vpop.f32.mrb[42].mxu0  ;;  %v1569_v60 = vpop.f32.mrb[42].mxu1 }
 0x142   :  { %v1529_v61 = vpop.f32.mrb[43].mxu0  ;;  %v1570_v62 = vpop.f32.mrb[43].mxu1 }
 0x147   :  { %v1606_v63 = vpop.f32.mrb[44].mxu0  ;;  %v1647_v1 = vpop.f32.mrb[44].mxu1 }
 0x148   :  { %2353 = vst [vmem:[#allocation5 + $0x160] sm:$0xff] %v1606_v63  ;;  %2355 = vst [vmem:[#allocation5 + $0x170] sm:$0xff] %v1647_v1  ;;  %v1608_v2 = vpop.f32.mrb[45].mxu0  ;;  %v1649_v4 = vpop.f32.mrb[45].mxu1 }
 0x149   :  { %2354 = vst [vmem:[#allocation5 + $0x168] sm:$0xff] %v1608_v2  ;;  %2356 = vst [vmem:[#allocation5 + $0x178] sm:$0xff] %v1649_v4  ;;  %v1610_v5 = vpop.f32.mrb[46].mxu0  ;;  %v1651_v6 = vpop.f32.mrb[46].mxu1 }
 0x14a   :  { %v1611_v7 = vpop.f32.mrb[47].mxu0  ;;  %v1652_v8 = vpop.f32.mrb[47].mxu1 }
 0x14f   :  { %v1688_v9 = vpop.f32.mrb[48].mxu0  ;;  %v1729_v10 = vpop.f32.mrb[48].mxu1 }
 0x150   :  { %2357 = vst [vmem:[#allocation5 + $0x180] sm:$0xff] %v1688_v9  ;;  %2359 = vst [vmem:[#allocation5 + $0x190] sm:$0xff] %v1729_v10  ;;  %v1690_v11 = vpop.f32.mrb[49].mxu0  ;;  %v1731_v13 = vpop.f32.mrb[49].mxu1 }
 0x151   :  { %2358 = vst [vmem:[#allocation5 + $0x188] sm:$0xff] %v1690_v11  ;;  %2360 = vst [vmem:[#allocation5 + $0x198] sm:$0xff] %v1731_v13  ;;  %v1692_v14 = vpop.f32.mrb[50].mxu0  ;;  %v1733_v15 = vpop.f32.mrb[50].mxu1 }
 0x152   :  { %v1693_v16 = vpop.f32.mrb[51].mxu0  ;;  %v1734_v17 = vpop.f32.mrb[51].mxu1 }
 0x157   :  { %v1770_v18 = vpop.f32.mrb[52].mxu0  ;;  %v1811_v19 = vpop.f32.mrb[52].mxu1 }
 0x158   :  { %2361 = vst [vmem:[#allocation5 + $0x1a0] sm:$0xff] %v1770_v18  ;;  %2363 = vst [vmem:[#allocation5 + $0x1b0] sm:$0xff] %v1811_v19  ;;  %v1772_v20 = vpop.f32.mrb[53].mxu0  ;;  %v1813_v21 = vpop.f32.mrb[53].mxu1 }
 0x159   :  { %2362 = vst [vmem:[#allocation5 + $0x1a8] sm:$0xff] %v1772_v20  ;;  %2364 = vst [vmem:[#allocation5 + $0x1b8] sm:$0xff] %v1813_v21  ;;  %v1774_v22 = vpop.f32.mrb[54].mxu0  ;;  %v1815_v23 = vpop.f32.mrb[54].mxu1 }
 0x15a   :  { %v1775_v24 = vpop.f32.mrb[55].mxu0  ;;  %v1816_v25 = vpop.f32.mrb[55].mxu1 }
 0x15f   :  { %v1852_v26 = vpop.f32.mrb[56].mxu0  ;;  %v1893_v27 = vpop.f32.mrb[56].mxu1 }
 0x160   :  { %2365 = vst [vmem:[#allocation5 + $0x1c0] sm:$0xff] %v1852_v26  ;;  %2367 = vst [vmem:[#allocation5 + $0x1d0] sm:$0xff] %v1893_v27  ;;  %v1854_v28 = vpop.f32.mrb[57].mxu0  ;;  %v1895_v29 = vpop.f32.mrb[57].mxu1 }
 0x161   :  { %2366 = vst [vmem:[#allocation5 + $0x1c8] sm:$0xff] %v1854_v28  ;;  %2368 = vst [vmem:[#allocation5 + $0x1d8] sm:$0xff] %v1895_v29  ;;  %v1856_v30 = vpop.f32.mrb[58].mxu0  ;;  %v1897_v31 = vpop.f32.mrb[58].mxu1 }
 0x162   :  { %v1857_v32 = vpop.f32.mrb[59].mxu0  ;;  %v1898_v33 = vpop.f32.mrb[59].mxu1 }
 0x167   :  { %v1934_v34 = vpop.f32.mrb[60].mxu0  ;;  %v1975_v35 = vpop.f32.mrb[60].mxu1 }
 0x168   :  { %2369 = vst [vmem:[#allocation5 + $0x1e0] sm:$0xff] %v1934_v34  ;;  %2371 = vst [vmem:[#allocation5 + $0x1f0] sm:$0xff] %v1975_v35  ;;  %v1936_v36 = vpop.f32.mrb[61].mxu0  ;;  %v1977_v37 = vpop.f32.mrb[61].mxu1 }
 0x169   :  { %2370 = vst [vmem:[#allocation5 + $0x1e8] sm:$0xff] %v1936_v36  ;;  %2372 = vst [vmem:[#allocation5 + $0x1f8] sm:$0xff] %v1977_v37  ;;  %v1938_v38 = vpop.f32.mrb[62].mxu0  ;;  %v1979_v39 = vpop.f32.mrb[62].mxu1 }
 0x16a   :  { %v1939_v40 = vpop.f32.mrb[63].mxu0  ;;  %v1980_v41 = vpop.f32.mrb[63].mxu1 }
 0x16f   :  { %v2016_v42 = vpop.f32.mrb[64].mxu0  ;;  %v2057_v3 = vpop.f32.mrb[64].mxu1 }
 0x170   :  { %2373 = vst [vmem:[#allocation5 + $0x200] sm:$0xff] %v2016_v42  ;;  %2375 = vst [vmem:[#allocation5 + $0x210] sm:$0xff] %v2057_v3  ;;  %v2018_v43 = vpop.f32.mrb[65].mxu0  ;;  %v2059_v44 = vpop.f32.mrb[65].mxu1 }
 0x171   :  { %2374 = vst [vmem:[#allocation5 + $0x208] sm:$0xff] %v2018_v43  ;;  %2376 = vst [vmem:[#allocation5 + $0x218] sm:$0xff] %v2059_v44  ;;  %v2020_v45 = vpop.f32.mrb[66].mxu0  ;;  %v2061_v46 = vpop.f32.mrb[66].mxu1 }
 0x172   :  { %v2021_v47 = vpop.f32.mrb[67].mxu0  ;;  %v2062_v0 = vpop.f32.mrb[67].mxu1 }
 0x177   :  { %v2098_v48 = vpop.f32.mrb[68].mxu0  ;;  %v2139_v49 = vpop.f32.mrb[68].mxu1 }
 0x178   :  { %2377 = vst [vmem:[#allocation5 + $0x220] sm:$0xff] %v2098_v48  ;;  %2379 = vst [vmem:[#allocation5 + $0x230] sm:$0xff] %v2139_v49  ;;  %v2100_v50 = vpop.f32.mrb[69].mxu0  ;;  %v2141_v51 = vpop.f32.mrb[69].mxu1 }
 0x179   :  { %2378 = vst [vmem:[#allocation5 + $0x228] sm:$0xff] %v2100_v50  ;;  %2380 = vst [vmem:[#allocation5 + $0x238] sm:$0xff] %v2141_v51  ;;  %v2102_v12 = vpop.f32.mrb[70].mxu0  ;;  %v2143_v52 = vpop.f32.mrb[70].mxu1 }
 0x17a   :  { %v2103_v53 = vpop.f32.mrb[71].mxu0  ;;  %v2144_v54 = vpop.f32.mrb[71].mxu1 }
 0x17f   :  { %v2180_v55 = vpop.f32.mrb[72].mxu0  ;;  %v2221_v56 = vpop.f32.mrb[72].mxu1 }
 0x180   :  { %2381 = vst [vmem:[#allocation5 + $0x240] sm:$0xff] %v2180_v55  ;;  %2383 = vst [vmem:[#allocation5 + $0x250] sm:$0xff] %v2221_v56  ;;  %v2182_v57 = vpop.f32.mrb[73].mxu0  ;;  %v2223_v58 = vpop.f32.mrb[73].mxu1 }
 0x181   :  { %2382 = vst [vmem:[#allocation5 + $0x248] sm:$0xff] %v2182_v57  ;;  %2384 = vst [vmem:[#allocation5 + $0x258] sm:$0xff] %v2223_v58  ;;  %v2184_v59 = vpop.f32.mrb[74].mxu0  ;;  %v2225_v60 = vpop.f32.mrb[74].mxu1 }
 0x182   :  { %v2185_v61 = vpop.f32.mrb[75].mxu0  ;;  %v2226_v62 = vpop.f32.mrb[75].mxu1 }
 0x187   :  { %v2262_v63 = vpop.f32.mrb[76].mxu0  ;;  %v2303_v1 = vpop.f32.mrb[76].mxu1 }
 0x188   :  { %2385 = vst [vmem:[#allocation5 + $0x260] sm:$0xff] %v2262_v63  ;;  %2388 = vst.msk [vmem:[#allocation5 + $0x270] sm:$0xff] %vm2387_vm4, %v2303_v1  ;;  %v2264_v2 = vpop.f32.mrb[77].mxu0  ;;  %v2529_v4 = vpop.f32.mrb[77].mxu1 }
 0x189   :  { %2386 = vst [vmem:[#allocation5 + $0x268] sm:$0xff] %v2264_v2  ;;  %v2266_v5 = vpop.f32.mrb[78].mxu0  ;;  %v2306_v6 = vpop.f32.mrb[78].mxu1 }
 0x18a   :  { %v2267_v7 = vpop.f32.mrb[79].mxu0  ;;  %v2530_v8 = vpop.f32.mrb[79].mxu1 }
 0x18b   :  { %2690 = shalt.err (!%p2687_p12)
}
 0x18c   :  { %s2691_s28 = scalar_lea.hbm %s2959_s2, 10112 }
 0x18d   :  { %p2692_p13 = scmp.ne.s32.totalorder %s2959_s2, %s2691_s28  ;;  %p2695_p0 = scmp.lt.u32.totalorder %s2691_s28, %s2959_s2 }
 0x18f   :  { %p2697_p1 = pnand %p2695_p0, %p2692_p13 }
 0x191   :  { %2700 = shalt.err (!%p2697_p1)
}
 0x192   :  { %2398 = dma.vmem_to_hbm [thread:$0]  %s2396_s24, 10112, %s2959_s2, [#allocation4]  }
 0x193   :  { %2703 = dma.done.wait [#allocation4], 10112  }
 0x194   :  { %2704 = vsyncadd [#allocation4], 4294957184 }
 0x195   :  { %2402 = vsyncpa [#allocation3], 1 }
 0x196   :  { %2403 = vsyncpa [#allocation4], 1 }

</bundles_post_ra>
